<compile_context>
chip_gen: v5e
topology: v5e:2x2
jax: 0.10.0
libtpu: 0.0.40
codegen_flags: <defaults>
</compile_context>

<pallas_src>
import functools

import jax
import jax.numpy as jnp
from jax.experimental import pallas as pl
from jax.experimental.pallas import tpu as pltpu


_MAX_HW_TILE = 8192      # lanes per block along the reduction axis (mult. of 128)
_MAX_ROWS_TILE = 8192    # hard cap on sublane rows per block


def _round_up(x, m):
    return (x + m - 1) // m * m


def _vmem_capacity_bytes():
    """Physical VMEM per TensorCore; conservative default if the query fails."""
    try:
        cap = getattr(pltpu.get_tpu_info(), "vmem_capacity_bytes", None)
        if cap:
            return int(cap)
    except Exception:
        pass
    return 64 * 1024 * 1024  # v7x-sized (most restrictive)


@functools.lru_cache(maxsize=None)
def _lane_dense_supported():
    """One-time eager AOT probe: can Mosaic lower the (R,1)->(1,R) f32 relayout
    used for the lane-dense finalize store?  Cached, so the decision is static
    and safe even when global_avg_pool2d is called under an outer jax.jit."""
    def probe(x_ref, o_ref):
        s = jnp.sum(x_ref[...], axis=-1, keepdims=True, dtype=jnp.float32)
        o_ref[...] = jnp.transpose(s, (1, 0))[None]

    try:
        fn = pl.pallas_call(
            probe,
            out_shape=jax.ShapeDtypeStruct((1, 1, 128), jnp.float32),
            grid_spec=pltpu.PrefetchScalarGridSpec(
                num_scalar_prefetch=0,
                grid=(1,),
                in_specs=[pl.BlockSpec((128, 128), lambda i: (0, 0))],
                out_specs=pl.BlockSpec((1, 1, 128), lambda i: (0, 0, 0)),
            ),
        )
        jax.jit(fn).lower(
            jax.ShapeDtypeStruct((128, 128), jnp.float32)).compile()
        return True
    except Exception:
        return False


def _make_single_step_kernel(inv_hw, lane_dense):
    """H*W fits in one block: no accumulator scratch, no init/finalize."""
    def kernel(x_ref, o_ref):
        means = jnp.sum(x_ref[...], axis=-1, keepdims=True,
                        dtype=jnp.float32) * inv_hw                 # (R, 1) f32
        if lane_dense:
            o_ref[...] = jnp.transpose(means, (1, 0))[None].astype(o_ref.dtype)
        else:
            o_ref[...] = means.astype(o_ref.dtype)
    return kernel


def _make_multi_step_kernel(hw, hw_tile, hw_steps, inv_hw, lane_dense):
    """H*W spans several blocks: f32 VMEM accumulator over grid dim 1."""
    ragged = (hw % hw_tile) != 0
    last_start = (hw_steps - 1) * hw_tile

    def kernel(x_ref, o_ref, acc_ref):
        j = pl.program_id(1)

        @pl.when(j == 0)
        def _init():
            acc_ref[...] = jnp.zeros_like(acc_ref)

        if ragged:
            # Steady-state steps: plain accumulate (~1 VPU add / element).
            @pl.when(j < hw_steps - 1)
            def _acc_full():
                acc_ref[...] += jnp.sum(x_ref[...], axis=-1, keepdims=True,
                                        dtype=jnp.float32)

            # Last step only: mask OOB lanes with a (1, hw_tile) row iota.
            @pl.when(j == hw_steps - 1)
            def _acc_masked():
                col = jax.lax.broadcasted_iota(
                    jnp.int32, (1, hw_tile), 1) + last_start
                x = jnp.where(col < hw, x_ref[...], 0)
                acc_ref[...] += jnp.sum(x, axis=-1, keepdims=True,
                                        dtype=jnp.float32)
        else:
            acc_ref[...] += jnp.sum(x_ref[...], axis=-1, keepdims=True,
                                    dtype=jnp.float32)

        @pl.when(j == hw_steps - 1)
        def _finalize():
            means = acc_ref[...] * inv_hw                           # (R, 1) f32
            if lane_dense:
                o_ref[...] = jnp.transpose(means, (1, 0))[None].astype(o_ref.dtype)
            else:
                o_ref[...] = means.astype(o_ref.dtype)

    return kernel


def _gap_rows(x2d, rows_tile, hw_tile, lane_dense):
    """Per-row means of x2d (rows, hw).  Returns a flat vector with rows padded
    up to a multiple of rows_tile; the caller slices off the padded tail.

    NOTE: when rows % rows_tile != 0, the last row tile's block extends past the
    logical array; the resulting garbage means land only in padded output rows
    that the caller discards and are never reduced over, so results are exact.
    """
    rows, hw = x2d.shape
    n_row_tiles = pl.cdiv(rows, rows_tile)
    hw_steps = pl.cdiv(hw, hw_tile)
    inv_hw = 1.0 / float(hw)
    itemsize = jnp.dtype(x2d.dtype).itemsize

    # VMEM budget computed from the actual buffers (double-buffered input +
    # output + lane-padded f32 accumulator) plus headroom, capped well below
    # the physical capacity of the current generation.
    padded_hw = _round_up(hw_tile, 128)
    in_block = _round_up(rows_tile, 8) * padded_hw * itemsize
    out_block = 8 * _round_up(rows_tile, 128) * itemsize if lane_dense \
        else _round_up(rows_tile, 8) * 128 * itemsize
    acc_block = _round_up(rows_tile, 8) * 128 * 4 if hw_steps > 1 else 0
    vmem_limit = int(min(
        max(32 * 1024 * 1024,
            2 * in_block + 2 * out_block + acc_block + 8 * 1024 * 1024),
        _vmem_capacity_bytes() * 3 // 4,
    ))

    if lane_dense:
        out_shape = jax.ShapeDtypeStruct((n_row_tiles, 1, rows_tile), x2d.dtype)
    else:
        out_shape = jax.ShapeDtypeStruct((n_row_tiles * rows_tile, 1), x2d.dtype)

    if hw_steps == 1:
        kernel = _make_single_step_kernel(inv_hw, lane_dense)
        grid = (n_row_tiles,)
        in_specs = [pl.BlockSpec((rows_tile, hw_tile), lambda i: (i, 0))]
        out_spec = (pl.BlockSpec((1, 1, rows_tile), lambda i: (i, 0, 0))
                    if lane_dense else
                    pl.BlockSpec((rows_tile, 1), lambda i: (i, 0)))
        scratch = ()
        dim_sem = ("parallel",)
    else:
        kernel = _make_multi_step_kernel(hw, hw_tile, hw_steps, inv_hw, lane_dense)
        grid = (n_row_tiles, hw_steps)                 # reduction axis last
        in_specs = [pl.BlockSpec((rows_tile, hw_tile), lambda i, j: (i, j))]
        out_spec = (pl.BlockSpec((1, 1, rows_tile), lambda i, j: (i, 0, 0))
                    if lane_dense else
                    pl.BlockSpec((rows_tile, 1), lambda i, j: (i, 0)))
        scratch = (pltpu.VMEM((rows_tile, 1), jnp.float32),)
        dim_sem = ("parallel", "arbitrary")

    out = pl.pallas_call(
        kernel,
        out_shape=out_shape,
        grid_spec=pltpu.PrefetchScalarGridSpec(
            num_scalar_prefetch=0,
            grid=grid,
            in_specs=in_specs,
            out_specs=out_spec,
            scratch_shapes=scratch,
        ),
        compiler_params=pltpu.CompilerParams(
            dimension_semantics=dim_sem,
            vmem_limit_bytes=vmem_limit,
        ),
        cost_estimate=pl.CostEstimate(
            flops=rows * hw,
            transcendentals=0,
            bytes_accessed=rows * hw * itemsize + rows * itemsize,
        ),
    )(x2d)
    # Row-tile-major flatten; padded tail rows are sliced off by the caller.
    return out.reshape(n_row_tiles * rows_tile)


def global_avg_pool2d(x):
    """x: (N, C, H, W) -> (N, C, 1, 1); mean over H, W (adaptive_avg_pool2d to 1x1)."""
    N, C, H, W = x.shape
    rows, hw = N * C, H * W
    x2d = x.reshape(rows, hw)

    itemsize = jnp.dtype(x.dtype).itemsize
    row_align = max(8, 32 // itemsize)        # 8 (f32) / 16 (bf16) / 32 (int8)

    # Generation-aware block budget: ~16 MiB on 128-MiB-VMEM chips (v5e/v6e),
    # ~8 MiB on 64-MiB chips (v7x); blocks are double-buffered by Pallas.
    vmem_cap = _vmem_capacity_bytes()
    block_bytes = (16 * 1024 * 1024 if vmem_cap >= 100 * 1024 * 1024
                   else 8 * 1024 * 1024)

    # Reduction tile first (fewer accumulator passes, longer contiguous DMA
    # rows); full H*W when it fits -> single-step fast path, no accumulator.
    hw_tile = hw if hw <= _MAX_HW_TILE else _MAX_HW_TILE
    padded_hw = _round_up(hw_tile, 128)       # lane padding in VMEM

    # Row tile from the remaining budget; kept moderate so the lane-padded
    # (rows_tile, 1) f32 accumulator and the (R,1)->(1,R) relayout stay small,
    # and 128-aligned when large so the lane-dense finalize store is unmasked.
    rows_tile = max(row_align, block_bytes // (padded_hw * itemsize))
    rows_tile = min(rows_tile, _MAX_ROWS_TILE)
    if rows_tile >= 128:
        rows_tile = (rows_tile // 128) * 128
    else:
        rows_tile = (rows_tile // row_align) * row_align

    if rows_tile >= rows:
        # Whole row axis would be one tile.  Split into >=2 tiles when possible
        # so the "parallel" axis can use both TensorCores on v7x (harmless on
        # single-TC v5e/v6e).
        if rows >= 2 * row_align:
            rows_tile = _round_up(pl.cdiv(rows, 2), row_align)
        else:
            rows_tile = rows                  # full-dim block (8-align exempt)

    lane_dense = _lane_dense_supported()
    flat = _gap_rows(x2d, rows_tile, hw_tile, lane_dense)
    return flat[:rows].reshape(N, C, 1, 1)


if __name__ == "__main__":
    key = jax.random.PRNGKey(0)

    # Primary check at the module's natural small shape (single-step fast path).
    x = jax.random.normal(key, (2, 4, 16, 16), dtype=jnp.float32)
    out = jax.block_until_ready(global_avg_pool2d(x))
    ref = jnp.mean(x, axis=(2, 3), keepdims=True)
    assert out.shape == (2, 4, 1, 1), out.shape
    assert jnp.allclose(out, ref, atol=1e-5, rtol=1e-5), \
        float(jnp.max(jnp.abs(out - ref)))

    # Secondary check: exercises the multi-step (accumulator + ragged-mask)
    # path and the >=2-row-tile split (H*W = 9216 > _MAX_HW_TILE).
    x2 = jax.random.normal(jax.random.PRNGKey(1), (2, 8, 96, 96),
                           dtype=jnp.float32)
    out2 = jax.block_until_ready(global_avg_pool2d(x2))
    ref2 = jnp.mean(x2, axis=(2, 3), keepdims=True)
    assert out2.shape == (2, 8, 1, 1), out2.shape
    assert jnp.allclose(out2, ref2, atol=1e-5, rtol=1e-5), \
        float(jnp.max(jnp.abs(out2 - ref2)))

    print("KERNEL_OK")
</pallas_src>

<mosaic_0001>
module attributes {stable_mosaic.version = 11 : i64} {
  func.func @kernel(%arg0: i32, %arg1: memref<8x256xf32, #tpu.memory_space<vmem>>, %arg2: memref<8x1xf32, #tpu.memory_space<vmem>>) attributes {dimension_semantics = [#tpu.dimension_semantics<parallel>], iteration_bounds = array<i64: 1>, scalar_prefetch = 0 : i64, scratch_operands = 0 : i64, tpu.core_type = #tpu.core_type<tc>, window_params = [{transform_indices = @transform_0, window_bounds = array<i64: 8, 256>}, {transform_indices = @transform_1, window_bounds = array<i64: 8, 1>}]} {
    %c0 = arith.constant 0 : index
    %c0_0 = arith.constant 0 : index
    %0 = vector.load %arg1[%c0, %c0_0] : memref<8x256xf32, #tpu.memory_space<vmem>>, vector<8x256xf32>
    %cst = arith.constant dense<0.000000e+00> : vector<8xf32>
    %1 = vector.multi_reduction <add>, %0, %cst [1] : vector<8x256xf32> to vector<8xf32>
    %2 = vector.shape_cast %1 : vector<8xf32> to vector<8x1xf32>
    %cst_1 = arith.constant 3.906250e-03 : f32
    %3 = vector.broadcast %cst_1 : f32 to vector<8x1xf32>
    %4 = arith.mulf %2, %3 : vector<8x1xf32>
    %c0_2 = arith.constant 0 : index
    %c0_3 = arith.constant 0 : index
    %5 = vector.load %arg2[%c0_2, %c0_3] : memref<8x1xf32, #tpu.memory_space<vmem>>, vector<8x1xf32>
    tpu.vector_store %arg2[%c0_2, %c0_3], %4 {strides = array<i32>} : memref<8x1xf32, #tpu.memory_space<vmem>>, vector<8x1xf32>,
    return
  }
  func.func @transform_0(%arg0: i32) -> (i32, i32) {
    %c0_i32 = arith.constant 0 : i32
    %c0_i32_0 = arith.constant 0 : i32
    return %arg0, %c0_i32 : i32, i32
  }
  func.func @transform_1(%arg0: i32) -> (i32, i32) {
    %c0_i32 = arith.constant 0 : i32
    %c0_i32_0 = arith.constant 0 : i32
    return %arg0, %c0_i32 : i32, i32
  }
}

</mosaic_0001>

<bundles_post_ra>
// kernel: tpu_custom_call.1
= control target key start
LH: loop header
LB: loop body
LE: loop exit
PB: predicated region body
PF: predicated region fallthrough
CT: control target
= control target key end

     0   :  { %6 = vsyncpa [#allocation3], 0  ;;  %s62_s9 = smov [#allocation2]   ;;  %s79_s0 = inlined_call_operand.hbm [shape: f32[8,256], index: 0, kind: input, shape index: {}]   ;;  %s80_s1 = inlined_call_operand.vmem [shape: f32[8,1], index: 1, kind: output, shape index: {}]  }
   0x1   :  { %s12_s8 = sshll.u32 %s79_s0, 4  ;;  %s14_s10 = sshll.u32 %s62_s9, 4  ;;  %s13_s8 = int_to_ptr.hbm [resolvable:$true] %s12_s8  ;;  %s15_s10 = int_to_ptr.vmem [resolvable:$true] %s14_s10 }
   0x2   :  { %17 = dma.hbm_to_vmem [thread:$0]  %s13_s8, 256, %s15_s10, [#allocation3]  }
   0x3   :  { %60 = dma.done.wait [#allocation3], 256  }
   0x4   :  { %61 = vsyncadd [#allocation3], 4294967040  ;;  %v22_v0 = vld [vmem:[#allocation2] sm:$0xff]  ;;  %v23_v1 = vld [vmem:[#allocation2 + $0x8] sm:$0xff]  ;;  %vm28_vm0 = vcmask 7168  }
   0x5   :  { %v24_v2 = vadd.f32 %v23_v1, %v22_v0 }
   0x7   :  { %25 = vadd.xlane.f32.xlu0 %v24_v2 }
  0x7a   :  { %v26_v3 = vpop.xlane.xlu0 %25 }
  0x7b   :  { %v27_v4 = vmul.f32 0.00390625, %v26_v3 }
  0x7d   :  { %29 = vst.msk [vmem:[%s80_s1] sm:$0xff] %vm28_vm0, %v27_v4 }
  0x7e   :  { %34 = vsyncpa [#allocation3], 1 }

</bundles_post_ra>
